<compile_context>
chip_gen: v6e
topology: v6e:2x2x1
jax: 0.10.0
libtpu: 0.0.40
codegen_flags: <defaults>
</compile_context>

<pallas_src>
import jax
import jax.numpy as jnp
from jax import lax
from jax.experimental import pallas as pl
from jax.experimental.pallas import tpu as pltpu

HIDDEN_SIZE = 64
INPUT_SIZE = 1
OUTPUT_SIZE = 2


def rnn_kernel(x_ref, wih_ref, whh_ref, b_ref, wfc_ref, bfc_ref, out_ref, pre_ref):
    # x_ref:   (T*B_pad, I)  time-major, batch-padded, flattened input
    # wih_ref: (I, H)        whh_ref: (H, H)        b_ref: (1, H)  = b_ih + b_hh
    # wfc_ref: (H, O)        bfc_ref: (1, O)
    # out_ref: (B_pad, O)
    # pre_ref: (T*B_pad, H)  VMEM scratch for the hoisted input projection
    B_pad, _ = out_ref.shape
    H = whh_ref.shape[0]
    T = pre_ref.shape[0] // B_pad
    I = x_ref.shape[1]

    # ---- hoisted input projection + fused bias (off the serial path) ----
    # pre[t*B_pad + b, :] = x_t[b] @ W_ih^T + (b_ih + b_hh), for ALL t at once.
    if I == 1:
        # Rank-1 outer product: pure VPU broadcast multiply, no MXU involved.
        pre_ref[...] = x_ref[...] * wih_ref[...] + b_ref[...]
    else:
        pre_ref[...] = (
            jnp.dot(x_ref[...], wih_ref[...], preferred_element_type=jnp.float32)
            + b_ref[...]
        )

    # Load the recurrent weights into vregs once; reused by every unrolled step.
    whh = whh_ref[...]

    # ---- serial recurrence: h_t = tanh(pre_t + h_{t-1} @ W_hh^T) --------
    def step(t, h):
        start = pl.multiple_of(t * B_pad, B_pad)          # 8-sublane aligned
        p_t = pre_ref[pl.ds(start, B_pad), :]             # (B_pad, H)
        return jnp.tanh(
            p_t + jnp.dot(h, whh, preferred_element_type=jnp.float32)
        )

    h0 = jnp.zeros((B_pad, H), dtype=jnp.float32)
    h_last = lax.fori_loop(0, T, step, h0, unroll=True)

    # ---- final FC on the last hidden state -------------------------------
    out_ref[...] = (
        jnp.dot(h_last, wfc_ref[...], preferred_element_type=jnp.float32)
        + bfc_ref[...]
    )


def prepare_params(params):
    """One-time weight preprocessing, hoisted out of the per-call hot path."""
    H = params["w_hh"].shape[0]
    O = params["w_fc"].shape[0]
    return {
        "wih_t": params["w_ih"].T.astype(jnp.float32),                       # (I, H)
        "whh_t": params["w_hh"].T.astype(jnp.float32),                       # (H, H)
        "b": (params["b_ih"] + params["b_hh"]).reshape(1, H).astype(jnp.float32),
        "wfc_t": params["w_fc"].T.astype(jnp.float32),                       # (H, O)
        "bfc": params["b_fc"].reshape(1, O).astype(jnp.float32),             # (1, O)
    }


@jax.jit
def simple_rnn_forward(x, prepped):
    """x: (B, T, I) float32 (batch_first, like the PyTorch module). Returns (B, O).

    `prepped` must come from prepare_params().  The whole call (layout ops +
    pallas_call + un-pad slice) is jit-fused into a single dispatch.
    """
    B, T, I = x.shape
    H = prepped["whh_t"].shape[0]
    O = prepped["wfc_t"].shape[1]
    B_pad = ((B + 7) // 8) * 8   # pad batch to the 8-sublane boundary

    x = x.astype(jnp.float32)
    # time-major, zero-pad batch, flatten -> (T*B_pad, I) so the hoisted
    # input projection is one whole-slab broadcast/matmul.
    x_tm = jnp.transpose(x, (1, 0, 2))                        # (T, B, I)
    x_tm = jnp.pad(x_tm, ((0, 0), (0, B_pad - B), (0, 0)))    # (T, B_pad, I)
    x2d = x_tm.reshape(T * B_pad, I)

    full = lambda shape: pl.BlockSpec(shape, lambda i: (0,) * len(shape))

    out = pl.pallas_call(
        rnn_kernel,
        out_shape=jax.ShapeDtypeStruct((B_pad, O), jnp.float32),
        grid=(1,),
        in_specs=[
            full((T * B_pad, I)),
            full((I, H)),
            full((H, H)),
            full((1, H)),
            full((H, O)),
            full((1, O)),
        ],
        out_specs=full((B_pad, O)),
        scratch_shapes=[pltpu.VMEM((T * B_pad, H), jnp.float32)],
        compiler_params=pltpu.CompilerParams(
            dimension_semantics=("arbitrary",)
        ),
    )(x2d, prepped["wih_t"], prepped["whh_t"], prepped["b"],
      prepped["wfc_t"], prepped["bfc"])

    return out[:B]


def init_params(key, input_size=INPUT_SIZE, hidden_size=HIDDEN_SIZE,
                output_size=OUTPUT_SIZE):
    """Deterministic init mirroring PyTorch's U(-1/sqrt(H), 1/sqrt(H)) convention."""
    ks = jax.random.split(key, 6)
    s_rnn = 1.0 / jnp.sqrt(hidden_size)
    s_fc = 1.0 / jnp.sqrt(hidden_size)
    u = lambda k, shape, s: jax.random.uniform(k, shape, jnp.float32, -s, s)
    return {
        "w_ih": u(ks[0], (hidden_size, input_size), s_rnn),
        "w_hh": u(ks[1], (hidden_size, hidden_size), s_rnn),
        "b_ih": u(ks[2], (hidden_size,), s_rnn),
        "b_hh": u(ks[3], (hidden_size,), s_rnn),
        "w_fc": u(ks[4], (output_size, hidden_size), s_fc),
        "b_fc": u(ks[5], (output_size,), s_fc),
    }


def reference_forward(x, params):
    """Pure-JAX reference identical to the PyTorch semantics (for sanity check)."""
    B, T, I = x.shape
    H = params["w_hh"].shape[0]
    h = jnp.zeros((B, H), jnp.float32)
    for t in range(T):
        h = jnp.tanh(
            x[:, t, :] @ params["w_ih"].T + params["b_ih"]
            + h @ params["w_hh"].T + params["b_hh"]
        )
    return h @ params["w_fc"].T + params["b_fc"]


if __name__ == "__main__":
    key = jax.random.PRNGKey(0)
    k_x, k_p = jax.random.split(key)

    B, T, I = 4, 8, INPUT_SIZE
    x = jax.random.normal(k_x, (B, T, I), dtype=jnp.float32)
    params = init_params(k_p)

    prepped = prepare_params(params)            # one-time, off the hot path
    out = simple_rnn_forward(x, prepped)
    out = jax.block_until_ready(out)

    ref = reference_forward(x, params)
    assert out.shape == (B, OUTPUT_SIZE)
    assert jnp.allclose(out, ref, atol=1e-4, rtol=1e-4)

    print("KERNEL_OK")
</pallas_src>

<mosaic_0001>
module attributes {stable_mosaic.version = 11 : i64} {
  func.func @rnn_kernel(%arg0: i32, %arg1: memref<64x1xf32, #tpu.memory_space<vmem>>, %arg2: memref<1x64xf32, #tpu.memory_space<vmem>>, %arg3: memref<64x64xf32, #tpu.memory_space<vmem>>, %arg4: memref<1x64xf32, #tpu.memory_space<vmem>>, %arg5: memref<64x2xf32, #tpu.memory_space<vmem>>, %arg6: memref<1x2xf32, #tpu.memory_space<vmem>>, %arg7: memref<8x2xf32, #tpu.memory_space<vmem>>, %arg8: memref<64x64xf32, #tpu.memory_space<vmem>>) attributes {dimension_semantics = [#tpu.dimension_semantics<arbitrary>], iteration_bounds = array<i64: 1>, scalar_prefetch = 0 : i64, scratch_operands = 1 : i64, tpu.core_type = #tpu.core_type<tc>, window_params = [{pipeline_mode = #tpu.pipeline_mode<synchronous>, transform_indices = @transform_0, window_bounds = array<i64: 64, 1>}, {pipeline_mode = #tpu.pipeline_mode<synchronous>, transform_indices = @transform_1, window_bounds = array<i64: 1, 64>}, {pipeline_mode = #tpu.pipeline_mode<synchronous>, transform_indices = @transform_2, window_bounds = array<i64: 64, 64>}, {pipeline_mode = #tpu.pipeline_mode<synchronous>, transform_indices = @transform_3, window_bounds = array<i64: 1, 64>}, {pipeline_mode = #tpu.pipeline_mode<synchronous>, transform_indices = @transform_4, window_bounds = array<i64: 64, 2>}, {pipeline_mode = #tpu.pipeline_mode<synchronous>, transform_indices = @transform_5, window_bounds = array<i64: 1, 2>}, {pipeline_mode = #tpu.pipeline_mode<synchronous>, transform_indices = @transform_6, window_bounds = array<i64: 8, 2>}]} {
    %c0 = arith.constant 0 : index
    %c0_0 = arith.constant 0 : index
    %0 = vector.load %arg1[%c0, %c0_0] : memref<64x1xf32, #tpu.memory_space<vmem>>, vector<64x1xf32>
    %c0_1 = arith.constant 0 : index
    %c0_2 = arith.constant 0 : index
    %1 = vector.load %arg2[%c0_1, %c0_2] : memref<1x64xf32, #tpu.memory_space<vmem>>, vector<1x64xf32>
    %2 = vector.broadcast %0 : vector<64x1xf32> to vector<64x64xf32>
    %3 = vector.broadcast %1 : vector<1x64xf32> to vector<64x64xf32>
    %4 = arith.mulf %2, %3 : vector<64x64xf32>
    %c0_3 = arith.constant 0 : index
    %c0_4 = arith.constant 0 : index
    %5 = vector.load %arg4[%c0_3, %c0_4] : memref<1x64xf32, #tpu.memory_space<vmem>>, vector<1x64xf32>
    %6 = vector.broadcast %5 : vector<1x64xf32> to vector<64x64xf32>
    %7 = arith.addf %4, %6 : vector<64x64xf32>
    %c0_5 = arith.constant 0 : index
    %c0_6 = arith.constant 0 : index
    %8 = vector.load %arg8[%c0_5, %c0_6] : memref<64x64xf32, #tpu.memory_space<vmem>>, vector<64x64xf32>
    tpu.vector_store %arg8[%c0_5, %c0_6], %7 {strides = array<i32>} : memref<64x64xf32, #tpu.memory_space<vmem>>, vector<64x64xf32>,
    %c0_7 = arith.constant 0 : index
    %c0_8 = arith.constant 0 : index
    %9 = vector.load %arg3[%c0_7, %c0_8] : memref<64x64xf32, #tpu.memory_space<vmem>>, vector<64x64xf32>
    %cst = arith.constant 0.000000e+00 : f32
    %10 = vector.broadcast %cst : f32 to vector<8x64xf32>
    %c0_i32 = arith.constant 0 : i32
    %c8_i32 = arith.constant 8 : i32
    %11 = arith.muli %c0_i32, %c8_i32 : i32
    %12 = tpu.assume_multiple %11, 8 : i32
    %13 = arith.index_cast %12 : i32 to index
    %c0_9 = arith.constant 0 : index
    %14 = vector.load %arg8[%13, %c0_9] : memref<64x64xf32, #tpu.memory_space<vmem>>, vector<8x64xf32>
    %cst_10 = arith.constant dense<0.000000e+00> : vector<8x64xf32>
    %15 = tpu.matmul %10, %9, %cst_10 {dimension_numbers = #tpu.dot_dimension_numbers<[1], [0], [0], [1], [0, 0, 1, 1], [], []>} : vector<8x64xf32>, vector<64x64xf32>, vector<8x64xf32> -> vector<8x64xf32>
    %16 = arith.addf %14, %15 : vector<8x64xf32>
    %17 = math.tanh %16 : vector<8x64xf32>
    %c1_i32 = arith.constant 1 : i32
    %c8_i32_11 = arith.constant 8 : i32
    %18 = arith.muli %c1_i32, %c8_i32_11 : i32
    %19 = tpu.assume_multiple %18, 8 : i32
    %20 = arith.index_cast %19 : i32 to index
    %c0_12 = arith.constant 0 : index
    %21 = vector.load %arg8[%20, %c0_12] : memref<64x64xf32, #tpu.memory_space<vmem>>, vector<8x64xf32>
    %cst_13 = arith.constant dense<0.000000e+00> : vector<8x64xf32>
    %22 = tpu.matmul %17, %9, %cst_13 {dimension_numbers = #tpu.dot_dimension_numbers<[1], [0], [0], [1], [0, 0, 1, 1], [], []>} : vector<8x64xf32>, vector<64x64xf32>, vector<8x64xf32> -> vector<8x64xf32>
    %23 = arith.addf %21, %22 : vector<8x64xf32>
    %24 = math.tanh %23 : vector<8x64xf32>
    %c2_i32 = arith.constant 2 : i32
    %c8_i32_14 = arith.constant 8 : i32
    %25 = arith.muli %c2_i32, %c8_i32_14 : i32
    %26 = tpu.assume_multiple %25, 8 : i32
    %27 = arith.index_cast %26 : i32 to index
    %c0_15 = arith.constant 0 : index
    %28 = vector.load %arg8[%27, %c0_15] : memref<64x64xf32, #tpu.memory_space<vmem>>, vector<8x64xf32>
    %cst_16 = arith.constant dense<0.000000e+00> : vector<8x64xf32>
    %29 = tpu.matmul %24, %9, %cst_16 {dimension_numbers = #tpu.dot_dimension_numbers<[1], [0], [0], [1], [0, 0, 1, 1], [], []>} : vector<8x64xf32>, vector<64x64xf32>, vector<8x64xf32> -> vector<8x64xf32>
    %30 = arith.addf %28, %29 : vector<8x64xf32>
    %31 = math.tanh %30 : vector<8x64xf32>
    %c3_i32 = arith.constant 3 : i32
    %c8_i32_17 = arith.constant 8 : i32
    %32 = arith.muli %c3_i32, %c8_i32_17 : i32
    %33 = tpu.assume_multiple %32, 8 : i32
    %34 = arith.index_cast %33 : i32 to index
    %c0_18 = arith.constant 0 : index
    %35 = vector.load %arg8[%34, %c0_18] : memref<64x64xf32, #tpu.memory_space<vmem>>, vector<8x64xf32>
    %cst_19 = arith.constant dense<0.000000e+00> : vector<8x64xf32>
    %36 = tpu.matmul %31, %9, %cst_19 {dimension_numbers = #tpu.dot_dimension_numbers<[1], [0], [0], [1], [0, 0, 1, 1], [], []>} : vector<8x64xf32>, vector<64x64xf32>, vector<8x64xf32> -> vector<8x64xf32>
    %37 = arith.addf %35, %36 : vector<8x64xf32>
    %38 = math.tanh %37 : vector<8x64xf32>
    %c4_i32 = arith.constant 4 : i32
    %c8_i32_20 = arith.constant 8 : i32
    %39 = arith.muli %c4_i32, %c8_i32_20 : i32
    %40 = tpu.assume_multiple %39, 8 : i32
    %41 = arith.index_cast %40 : i32 to index
    %c0_21 = arith.constant 0 : index
    %42 = vector.load %arg8[%41, %c0_21] : memref<64x64xf32, #tpu.memory_space<vmem>>, vector<8x64xf32>
    %cst_22 = arith.constant dense<0.000000e+00> : vector<8x64xf32>
    %43 = tpu.matmul %38, %9, %cst_22 {dimension_numbers = #tpu.dot_dimension_numbers<[1], [0], [0], [1], [0, 0, 1, 1], [], []>} : vector<8x64xf32>, vector<64x64xf32>, vector<8x64xf32> -> vector<8x64xf32>
    %44 = arith.addf %42, %43 : vector<8x64xf32>
    %45 = math.tanh %44 : vector<8x64xf32>
    %c5_i32 = arith.constant 5 : i32
    %c8_i32_23 = arith.constant 8 : i32
    %46 = arith.muli %c5_i32, %c8_i32_23 : i32
    %47 = tpu.assume_multiple %46, 8 : i32
    %48 = arith.index_cast %47 : i32 to index
    %c0_24 = arith.constant 0 : index
    %49 = vector.load %arg8[%48, %c0_24] : memref<64x64xf32, #tpu.memory_space<vmem>>, vector<8x64xf32>
    %cst_25 = arith.constant dense<0.000000e+00> : vector<8x64xf32>
    %50 = tpu.matmul %45, %9, %cst_25 {dimension_numbers = #tpu.dot_dimension_numbers<[1], [0], [0], [1], [0, 0, 1, 1], [], []>} : vector<8x64xf32>, vector<64x64xf32>, vector<8x64xf32> -> vector<8x64xf32>
    %51 = arith.addf %49, %50 : vector<8x64xf32>
    %52 = math.tanh %51 : vector<8x64xf32>
    %c6_i32 = arith.constant 6 : i32
    %c8_i32_26 = arith.constant 8 : i32
    %53 = arith.muli %c6_i32, %c8_i32_26 : i32
    %54 = tpu.assume_multiple %53, 8 : i32
    %55 = arith.index_cast %54 : i32 to index
    %c0_27 = arith.constant 0 : index
    %56 = vector.load %arg8[%55, %c0_27] : memref<64x64xf32, #tpu.memory_space<vmem>>, vector<8x64xf32>
    %cst_28 = arith.constant dense<0.000000e+00> : vector<8x64xf32>
    %57 = tpu.matmul %52, %9, %cst_28 {dimension_numbers = #tpu.dot_dimension_numbers<[1], [0], [0], [1], [0, 0, 1, 1], [], []>} : vector<8x64xf32>, vector<64x64xf32>, vector<8x64xf32> -> vector<8x64xf32>
    %58 = arith.addf %56, %57 : vector<8x64xf32>
    %59 = math.tanh %58 : vector<8x64xf32>
    %c7_i32 = arith.constant 7 : i32
    %c8_i32_29 = arith.constant 8 : i32
    %60 = arith.muli %c7_i32, %c8_i32_29 : i32
    %61 = tpu.assume_multiple %60, 8 : i32
    %62 = arith.index_cast %61 : i32 to index
    %c0_30 = arith.constant 0 : index
    %63 = vector.load %arg8[%62, %c0_30] : memref<64x64xf32, #tpu.memory_space<vmem>>, vector<8x64xf32>
    %cst_31 = arith.constant dense<0.000000e+00> : vector<8x64xf32>
    %64 = tpu.matmul %59, %9, %cst_31 {dimension_numbers = #tpu.dot_dimension_numbers<[1], [0], [0], [1], [0, 0, 1, 1], [], []>} : vector<8x64xf32>, vector<64x64xf32>, vector<8x64xf32> -> vector<8x64xf32>
    %65 = arith.addf %63, %64 : vector<8x64xf32>
    %66 = math.tanh %65 : vector<8x64xf32>
    %c8_i32_32 = arith.constant 8 : i32
    %c0_33 = arith.constant 0 : index
    %c0_34 = arith.constant 0 : index
    %67 = vector.load %arg5[%c0_33, %c0_34] : memref<64x2xf32, #tpu.memory_space<vmem>>, vector<64x2xf32>
    %cst_35 = arith.constant dense<0.000000e+00> : vector<8x2xf32>
    %68 = tpu.matmul %66, %67, %cst_35 {dimension_numbers = #tpu.dot_dimension_numbers<[1], [0], [0], [1], [0, 0, 1, 1], [], []>} : vector<8x64xf32>, vector<64x2xf32>, vector<8x2xf32> -> vector<8x2xf32>
    %c0_36 = arith.constant 0 : index
    %c0_37 = arith.constant 0 : index
    %69 = vector.load %arg6[%c0_36, %c0_37] : memref<1x2xf32, #tpu.memory_space<vmem>>, vector<1x2xf32>
    %70 = vector.broadcast %69 : vector<1x2xf32> to vector<8x2xf32>
    %71 = arith.addf %68, %70 : vector<8x2xf32>
    %c0_38 = arith.constant 0 : index
    %c0_39 = arith.constant 0 : index
    %72 = vector.load %arg7[%c0_38, %c0_39] : memref<8x2xf32, #tpu.memory_space<vmem>>, vector<8x2xf32>
    tpu.vector_store %arg7[%c0_38, %c0_39], %71 {strides = array<i32>} : memref<8x2xf32, #tpu.memory_space<vmem>>, vector<8x2xf32>,
    return
  }
  func.func @transform_0(%arg0: i32) -> (i32, i32) {
    %c0_i32 = arith.constant 0 : i32
    %c0_i32_0 = arith.constant 0 : i32
    %c0_i32_1 = arith.constant 0 : i32
    return %c0_i32, %c0_i32_0 : i32, i32
  }
  func.func @transform_1(%arg0: i32) -> (i32, i32) {
    %c0_i32 = arith.constant 0 : i32
    %c0_i32_0 = arith.constant 0 : i32
    %c0_i32_1 = arith.constant 0 : i32
    return %c0_i32, %c0_i32_0 : i32, i32
  }
  func.func @transform_2(%arg0: i32) -> (i32, i32) {
    %c0_i32 = arith.constant 0 : i32
    %c0_i32_0 = arith.constant 0 : i32
    %c0_i32_1 = arith.constant 0 : i32
    return %c0_i32, %c0_i32_0 : i32, i32
  }
  func.func @transform_3(%arg0: i32) -> (i32, i32) {
    %c0_i32 = arith.constant 0 : i32
    %c0_i32_0 = arith.constant 0 : i32
    %c0_i32_1 = arith.constant 0 : i32
    return %c0_i32, %c0_i32_0 : i32, i32
  }
  func.func @transform_4(%arg0: i32) -> (i32, i32) {
    %c0_i32 = arith.constant 0 : i32
    %c0_i32_0 = arith.constant 0 : i32
    %c0_i32_1 = arith.constant 0 : i32
    return %c0_i32, %c0_i32_0 : i32, i32
  }
  func.func @transform_5(%arg0: i32) -> (i32, i32) {
    %c0_i32 = arith.constant 0 : i32
    %c0_i32_0 = arith.constant 0 : i32
    %c0_i32_1 = arith.constant 0 : i32
    return %c0_i32, %c0_i32_0 : i32, i32
  }
  func.func @transform_6(%arg0: i32) -> (i32, i32) {
    %c0_i32 = arith.constant 0 : i32
    %c0_i32_0 = arith.constant 0 : i32
    %c0_i32_1 = arith.constant 0 : i32
    return %c0_i32, %c0_i32_0 : i32, i32
  }
}

</mosaic_0001>

<bundles_post_ra>
// kernel: simple_rnn_forward.1
= control target key start
LH: loop header
LB: loop body
LE: loop exit
PB: predicated region body
PF: predicated region fallthrough
CT: control target
= control target key end

     0   :  { %v1111_v0 = vmov 0.0   ;;  %vm1112_vm0 = vmmov 0   ;;  %v1113_v3 = vmov 0   ;;  %vm101_vm1 = vcmask 523264   ;;  %s1440_s2 = inlined_call_operand.vmem [shape: f32[64,64], index: 2, kind: input, shape index: {}]   ;;  %s1441_s0 = inlined_call_operand.vmem [shape: f32[64,1], index: 0, kind: input, shape index: {}]   ;;  %s1442_s1 = inlined_call_operand.vmem [shape: f32[1,64], index: 1, kind: input, shape index: {}]   ;;  %s1443_s3 = inlined_call_operand.vmem [shape: f32[1,64], index: 3, kind: input, shape index: {}]   ;;  %s1444_s4 = inlined_call_operand.vmem [shape: f32[64,2], index: 4, kind: input, shape index: {}]   ;;  %s1445_s5 = inlined_call_operand.vmem [shape: f32[1,2], index: 5, kind: input, shape index: {}]   ;;  %s1446_s6 = inlined_call_operand.vmem [shape: f32[8,2], index: 6, kind: output, shape index: {}]  }
   0x1   :  { %919 = vmatprep.subr.mxu0 %v1111_v0  ;;  %v1153_v1 = vld [vmem:[%s1440_s2 + $0x38] sm:$0xff]  ;;  %v1158_v2 = vld [vmem:[%s1440_s2 + $0x30] sm:$0xff]  ;;  %935 = vmatprep.mubr.msk.f32.mxu0 %vm1112_vm0, %v1111_v0  ;;  %v1167_v4 = vld [vmem:[%s1440_s2 + $0x28] sm:$0xff]  ;;  %vm821_vm2 = vcmask 15360  }
   0x2   :  { %920 = vmatpush3.msra.mxu0 %v1153_v1  ;;  %1093 = vset.pattern.permute.xlu0 %v1113_v3  ;;  %v23_v5 = vld [vmem:[%s1441_s0] sm:$0xff]  ;;  %v24_v7 = vld [vmem:[%s1441_s0 + $0x8] sm:$0xff]  ;;  %v1190_v8 = vld [vmem:[%s1440_s2 + $0x18] sm:$0xff] }
   0x3   :  { %921 = vmatprep.subr.mxu0 %v1111_v0  ;;  %938 = vmatprep.subr.mxu1 %v1111_v0  ;;  %v1178_v6 = vld [vmem:[%s1440_s2 + $0x20] sm:$0xff]  ;;  %v1198_v9 = vld [vmem:[%s1440_s2 + $0x10] sm:$0xff]  ;;  %v1210_v11 = vld [vmem:[%s1440_s2 + $0x8] sm:$0xff] }
   0x4   :  { %922 = vmatpush3.msra.mxu0 %v1158_v2  ;;  %34 = vperm.xlu0 %1093, %v23_v5   ;;  %v27_v10 = vld [vmem:[%s1441_s0 + $0x20] sm:$0xff]  ;;  %v29_v13 = vld [vmem:[%s1441_s0 + $0x30] sm:$0xff]  ;;  %v26_v34 = vld [vmem:[%s1441_s0 + $0x18] sm:$0xff] }
   0x5   :  { %923 = vmatprep.subr.mxu0 %v1111_v0  ;;  %939 = vmatpush3.msra.mxu1 %v1153_v1  ;;  %v1218_v12 = vld [vmem:[%s1440_s2] sm:$0xff]  ;;  %v25_v33 = vld [vmem:[%s1441_s0 + $0x10] sm:$0xff]  ;;  %v28_v35 = vld [vmem:[%s1441_s0 + $0x28] sm:$0xff] }
   0x6   :  { %924 = vmatpush3.msra.mxu0 %v1167_v4  ;;  %940 = vmatprep.subr.mxu1 %v1111_v0  ;;  %v1261_v14 = vld [vmem:[%s1442_s1] ss:$0 sm:$0xff]  ;;  %v30_v36 = vld [vmem:[%s1441_s0 + $0x38] sm:$0xff] }
   0x7   :  { %925 = vmatprep.subr.mxu0 %v1111_v0  ;;  %941 = vmatpush3.msra.mxu1 %v1158_v2  ;;  %v1266_v15 = vld [vmem:[%s1443_s3] ss:$0 sm:$0xff] }
   0x8   :  { %926 = vmatpush3.msra.mxu0 %v1178_v6  ;;  %39 = vperm.xlu0 %1093, %v24_v7  }
   0x9   :  { %927 = vmatprep.subr.mxu0 %v1111_v0  ;;  %942 = vmatprep.subr.mxu1 %v1111_v0 }
   0xa   :  { %928 = vmatpush3.msra.mxu0 %v1190_v8  ;;  %943 = vmatpush3.msra.mxu1 %v1167_v4 }
   0xb   :  { %929 = vmatprep.subr.mxu0 %v1111_v0  ;;  %944 = vmatprep.subr.mxu1 %v1111_v0 }
   0xc   :  { %930 = vmatpush3.msra.mxu0 %v1198_v9  ;;  %54 = vperm.xlu0 %1093, %v27_v10  }
   0xd   :  { %931 = vmatprep.subr.mxu0 %v1111_v0  ;;  %945 = vmatpush3.msra.mxu1 %v1178_v6 }
   0xe   :  { %932 = vmatpush3.msra.mxu0 %v1210_v11  ;;  %946 = vmatprep.subr.mxu1 %v1111_v0 }
   0xf   :  { %933 = vmatprep.subr.mxu0 %v1111_v0  ;;  %947 = vmatpush3.msra.mxu1 %v1190_v8 }
  0x10   :  { %934 = vmatpush3.msra.mxu0 %v1218_v12  ;;  %64 = vperm.xlu0 %1093, %v29_v13  }
  0x11   :  { %936 = vmatmul.mubr.f32.vlgmr.msra.gmra.mxu0 %v1111_v0  ;;  %948 = vmatprep.subr.mxu1 %v1111_v0 }
  0x12   :  { %949 = vmatpush3.msra.mxu1 %v1198_v9  ;;  %954 = vmatprep.mubr.msk.f32.mxu1 %vm1112_vm0, %v1111_v0 }
  0x13   :  { %950 = vmatprep.subr.mxu1 %v1111_v0  ;;  %957 = vmatprep.subr.mxu0 %v1111_v0 }
  0x14   :  { %951 = vmatpush3.msra.mxu1 %v1210_v11  ;;  %958 = vmatpush3.msra.mxu0 %v1153_v1 }
  0x15   :  { %952 = vmatprep.subr.mxu1 %v1111_v0  ;;  %959 = vmatprep.subr.mxu0 %v1111_v0 }
  0x16   :  { %953 = vmatpush3.msra.mxu1 %v1218_v12  ;;  %960 = vmatpush3.msra.mxu0 %v1158_v2 }
  0x17   :  { %961 = vmatprep.subr.mxu0 %v1111_v0  ;;  %973 = vmatprep.mubr.msk.f32.mxu0 %vm1112_vm0, %v1111_v0 }
  0x18   :  { %962 = vmatpush3.msra.mxu0 %v1167_v4  ;;  %1094 = vset.pattern.permute.xlu1 %v1113_v3 }
  0x19   :  { %963 = vmatprep.subr.mxu0 %v1111_v0  ;;  %976 = vmatprep.subr.mxu1 %v1111_v0 }
  0x1a   :  { %964 = vmatpush3.msra.mxu0 %v1178_v6  ;;  %44 = vperm.xlu1 %1094, %v25_v33  }
  0x1b   :  { %965 = vmatprep.subr.mxu0 %v1111_v0 }
  0x1c   :  { %966 = vmatpush3.msra.mxu0 %v1190_v8 }
  0x1d   :  { %967 = vmatprep.subr.mxu0 %v1111_v0 }
  0x1e   :  { %968 = vmatpush3.msra.mxu0 %v1198_v9  ;;  %49 = vperm.xlu1 %1094, %v26_v34  }
  0x1f   :  { %969 = vmatprep.subr.mxu0 %v1111_v0 }
  0x20   :  { %970 = vmatpush3.msra.mxu0 %v1210_v11 }
  0x21   :  { %971 = vmatprep.subr.mxu0 %v1111_v0 }
  0x22   :  { %972 = vmatpush3.msra.mxu0 %v1218_v12  ;;  %59 = vperm.xlu1 %1094, %v28_v35  }
  0x23   :  { %995 = vmatprep.subr.mxu0 %v1111_v0 }
  0x26   :  { %69 = vperm.xlu1 %1094, %v30_v36  }
  0x7f   :  { %v35_v16 = vpop.permute.xlu0 %34 }
  0x80   :  { %v78_v17 = vmul.f32 %v1261_v14, %v35_v16 }
  0x82   :  { %v93_v18 = vadd.f32 %v1266_v15, %v78_v17  ;;  %v739_v17 = vld [vmem:[%s1444_s4 + $0x30] sm:$0xff] }
  0x83   :  { %v40_v19 = vpop.permute.xlu0 %39 }
  0x84   :  { %102 = vst.msk [vmem:[#allocation2] sm:$0xff] %vm101_vm1, %v93_v18  ;;  %v79_v20 = vmul.f32 %v1261_v14, %v40_v19  ;;  %v738_v18 = vld [vmem:[%s1444_s4 + $0x28] sm:$0xff]  ;;  %v737_v19 = vld [vmem:[%s1444_s4 + $0x20] sm:$0xff] }
  0x86   :  { %v94_v21 = vadd.f32 %v1266_v15, %v79_v20  ;;  %v736_v20 = vld [vmem:[%s1444_s4 + $0x18] sm:$0xff] }
  0x87   :  { %v55_v22 = vpop.permute.xlu0 %54 }
  0x88   :  { %103 = vst.msk [vmem:[#allocation2 + $0x8] sm:$0xff] %vm101_vm1, %v94_v21  ;;  %v82_v23 = vmul.f32 %v1261_v14, %v55_v22  ;;  %v735_v21 = vld [vmem:[%s1444_s4 + $0x10] sm:$0xff]  ;;  %v734_v22 = vld [vmem:[%s1444_s4 + $0x8] sm:$0xff] }
  0x8a   :  { %v97_v24 = vadd.f32 %v1266_v15, %v82_v23  ;;  %v733_v23 = vld [vmem:[%s1444_s4] sm:$0xff] }
  0x8b   :  { %v65_v25 = vpop.permute.xlu0 %64  ;;  %v118_v28 = vld [vmem:[#allocation2] sm:$0xff] }
  0x8c   :  { %106 = vst.msk [vmem:[#allocation2 + $0x20] sm:$0xff] %vm101_vm1, %v97_v24  ;;  %v84_v26 = vmul.f32 %v1261_v14, %v65_v25 }
  0x8e   :  { %v99_v27 = vadd.f32 %v1266_v15, %v84_v26 }
  0x8f   :  { %v195_v37 = vld [vmem:[#allocation2 + $0x8] sm:$0xff] }
  0x90   :  { %108 = vst.msk [vmem:[#allocation2 + $0x30] sm:$0xff] %vm101_vm1, %v99_v27 }
  0x93   :  { %v426_v3 = vld [vmem:[#allocation2 + $0x20] sm:$0xff] }
  0x95   :  { %v45_v41 = vpop.permute.xlu1 %44 }
  0x96   :  { %v80_v42 = vmul.f32 %v1261_v14, %v45_v41 }
  0x98   :  { %v95_v44 = vadd.f32 %v1266_v15, %v80_v42 }
  0x99   :  { %v50_v45 = vpop.permute.xlu1 %49 }
  0x9a   :  { %104 = vst.msk [vmem:[#allocation2 + $0x10] sm:$0xff] %vm101_vm1, %v95_v44  ;;  %v81_v46 = vmul.f32 %v1261_v14, %v50_v45 }
  0x9c   :  { %v96_v47 = vadd.f32 %v1266_v15, %v81_v46 }
  0x9d   :  { %v60_v48 = vpop.permute.xlu1 %59 }
  0x9e   :  { %105 = vst.msk [vmem:[#allocation2 + $0x18] sm:$0xff] %vm101_vm1, %v96_v47  ;;  %v83_v49 = vmul.f32 %v1261_v14, %v60_v48 }
  0xa0   :  { %v98_v50 = vadd.f32 %v1266_v15, %v83_v49 }
  0xa1   :  { %v70_v51 = vpop.permute.xlu1 %69  ;;  %v272_v54 = vld [vmem:[#allocation2 + $0x10] sm:$0xff] }
  0xa2   :  { %107 = vst.msk [vmem:[#allocation2 + $0x28] sm:$0xff] %vm101_vm1, %v98_v50  ;;  %v85_v52 = vmul.f32 %v1261_v14, %v70_v51 }
  0xa4   :  { %v100_v53 = vadd.f32 %v1266_v15, %v85_v52 }
  0xa5   :  { %v349_v59 = vld [vmem:[#allocation2 + $0x18] sm:$0xff] }
  0xa6   :  { %109 = vst.msk [vmem:[#allocation2 + $0x38] sm:$0xff] %vm101_vm1, %v100_v53 }
  0xad   :  { %v657_v24 = vld [vmem:[#allocation2 + $0x38] sm:$0xff] }
  0xd1   :  { %v188_v29 = vpop.f32.mrf.mxu0 }
  0xd2   :  { %v192_v30 = vadd.f32 %v188_v29, %v118_v28  ;;  %v836_v29 = vld [vmem:[%s1445_s5] ss:$0 sm:$0xff] }
  0xd3   :  { %v937_v31 = vpop.f32.mrf.mxu0 }
  0xd4   :  { %1095 = vtanh.f32 %v192_v30 }
  0xe1   :  { %v1096_v32 = vpop.eup %1095 }
  0xe2   :  { %955 = vmatmul.mubr.msk.f32.vlgmr.msra.gmra.mxu1 %vm101_vm1, %v1096_v32 }
  0xe3   :  { %977 = vmatpush3.msra.mxu1 %v1153_v1  ;;  %992 = vmatprep.mubr.msk.f32.mxu1 %vm1112_vm0, %v1111_v0 }
  0xe4   :  { %978 = vmatprep.subr.mxu1 %v1111_v0 }
  0xe5   :  { %979 = vmatpush3.msra.mxu1 %v1158_v2 }
  0xe6   :  { %980 = vmatprep.subr.mxu1 %v1111_v0 }
  0xe7   :  { %981 = vmatpush3.msra.mxu1 %v1167_v4 }
  0xe8   :  { %982 = vmatprep.subr.mxu1 %v1111_v0 }
  0xe9   :  { %983 = vmatpush3.msra.mxu1 %v1178_v6 }
  0xea   :  { %984 = vmatprep.subr.mxu1 %v1111_v0 }
  0xeb   :  { %985 = vmatpush3.msra.mxu1 %v1190_v8 }
  0xec   :  { %986 = vmatprep.subr.mxu1 %v1111_v0 }
  0xed   :  { %987 = vmatpush3.msra.mxu1 %v1198_v9 }
  0xee   :  { %988 = vmatprep.subr.mxu1 %v1111_v0 }
  0xef   :  { %989 = vmatpush3.msra.mxu1 %v1210_v11 }
  0xf0   :  { %990 = vmatprep.subr.mxu1 %v1111_v0 }
  0xf1   :  { %991 = vmatpush3.msra.mxu1 %v1218_v12 }
  0xf2   :  { %1014 = vmatprep.subr.mxu1 %v1111_v0 }
 0x1a2   :  { %v265_v38 = vpop.f32.mrf.mxu1 }
 0x1a3   :  { %v269_v39 = vadd.f32 %v265_v38, %v195_v37 }
 0x1a4   :  { %v956_v40 = vpop.f32.mrf.mxu1 }
 0x1a5   :  { %1097 = vtanh.f32 %v269_v39 }
 0x1b2   :  { %v1098_v43 = vpop.eup %1097 }
 0x1b3   :  { %974 = vmatmul.mubr.msk.f32.vlgmr.msra.gmra.mxu0 %vm101_vm1, %v1098_v43 }
 0x1b4   :  { %996 = vmatpush3.msra.mxu0 %v1153_v1  ;;  %1011 = vmatprep.mubr.msk.f32.mxu0 %vm1112_vm0, %v1111_v0 }
 0x1b5   :  { %997 = vmatprep.subr.mxu0 %v1111_v0 }
 0x1b6   :  { %998 = vmatpush3.msra.mxu0 %v1158_v2 }
 0x1b7   :  { %999 = vmatprep.subr.mxu0 %v1111_v0 }
 0x1b8   :  { %1000 = vmatpush3.msra.mxu0 %v1167_v4 }
 0x1b9   :  { %1001 = vmatprep.subr.mxu0 %v1111_v0 }
 0x1ba   :  { %1002 = vmatpush3.msra.mxu0 %v1178_v6 }
 0x1bb   :  { %1003 = vmatprep.subr.mxu0 %v1111_v0 }
 0x1bc   :  { %1004 = vmatpush3.msra.mxu0 %v1190_v8 }
 0x1bd   :  { %1005 = vmatprep.subr.mxu0 %v1111_v0 }
 0x1be   :  { %1006 = vmatpush3.msra.mxu0 %v1198_v9 }
 0x1bf   :  { %1007 = vmatprep.subr.mxu0 %v1111_v0 }
 0x1c0   :  { %1008 = vmatpush3.msra.mxu0 %v1210_v11 }
 0x1c1   :  { %1009 = vmatprep.subr.mxu0 %v1111_v0 }
 0x1c2   :  { %1010 = vmatpush3.msra.mxu0 %v1218_v12 }
 0x1c3   :  { %1033 = vmatprep.subr.mxu0 %v1111_v0 }
 0x273   :  { %v342_v55 = vpop.f32.mrf.mxu0 }
 0x274   :  { %v346_v56 = vadd.f32 %v342_v55, %v272_v54 }
 0x275   :  { %v975_v57 = vpop.f32.mrf.mxu0 }
 0x276   :  { %1099 = vtanh.f32 %v346_v56 }
 0x283   :  { %v1100_v58 = vpop.eup %1099 }
 0x284   :  { %993 = vmatmul.mubr.msk.f32.vlgmr.msra.gmra.mxu1 %vm101_vm1, %v1100_v58 }
 0x285   :  { %1015 = vmatpush3.msra.mxu1 %v1153_v1  ;;  %1030 = vmatprep.mubr.msk.f32.mxu1 %vm1112_vm0, %v1111_v0 }
 0x286   :  { %1016 = vmatprep.subr.mxu1 %v1111_v0 }
 0x287   :  { %1017 = vmatpush3.msra.mxu1 %v1158_v2 }
 0x288   :  { %1018 = vmatprep.subr.mxu1 %v1111_v0 }
 0x289   :  { %1019 = vmatpush3.msra.mxu1 %v1167_v4 }
 0x28a   :  { %1020 = vmatprep.subr.mxu1 %v1111_v0 }
 0x28b   :  { %1021 = vmatpush3.msra.mxu1 %v1178_v6 }
 0x28c   :  { %1022 = vmatprep.subr.mxu1 %v1111_v0 }
 0x28d   :  { %1023 = vmatpush3.msra.mxu1 %v1190_v8 }
 0x28e   :  { %1024 = vmatprep.subr.mxu1 %v1111_v0 }
 0x28f   :  { %1025 = vmatpush3.msra.mxu1 %v1198_v9 }
 0x290   :  { %1026 = vmatprep.subr.mxu1 %v1111_v0 }
 0x291   :  { %1027 = vmatpush3.msra.mxu1 %v1210_v11 }
 0x292   :  { %1028 = vmatprep.subr.mxu1 %v1111_v0 }
 0x293   :  { %1029 = vmatpush3.msra.mxu1 %v1218_v12 }
 0x294   :  { %1052 = vmatprep.subr.mxu1 %v1111_v0 }
 0x344   :  { %v419_v60 = vpop.f32.mrf.mxu1 }
 0x345   :  { %v423_v61 = vadd.f32 %v419_v60, %v349_v59 }
 0x346   :  { %v994_v62 = vpop.f32.mrf.mxu1 }
 0x347   :  { %1101 = vtanh.f32 %v423_v61 }
 0x354   :  { %v1102_v63 = vpop.eup %1101 }
 0x355   :  { %1012 = vmatmul.mubr.msk.f32.vlgmr.msra.gmra.mxu0 %vm101_vm1, %v1102_v63 }
 0x356   :  { %1034 = vmatpush3.msra.mxu0 %v1153_v1  ;;  %1049 = vmatprep.mubr.msk.f32.mxu0 %vm1112_vm0, %v1111_v0 }
 0x357   :  { %1035 = vmatprep.subr.mxu0 %v1111_v0 }
 0x358   :  { %1036 = vmatpush3.msra.mxu0 %v1158_v2 }
 0x359   :  { %1037 = vmatprep.subr.mxu0 %v1111_v0 }
 0x35a   :  { %1038 = vmatpush3.msra.mxu0 %v1167_v4 }
 0x35b   :  { %1039 = vmatprep.subr.mxu0 %v1111_v0 }
 0x35c   :  { %1040 = vmatpush3.msra.mxu0 %v1178_v6 }
 0x35d   :  { %1041 = vmatprep.subr.mxu0 %v1111_v0 }
 0x35e   :  { %1042 = vmatpush3.msra.mxu0 %v1190_v8 }
 0x35f   :  { %1043 = vmatprep.subr.mxu0 %v1111_v0 }
 0x360   :  { %1044 = vmatpush3.msra.mxu0 %v1198_v9 }
 0x361   :  { %1045 = vmatprep.subr.mxu0 %v1111_v0 }
 0x362   :  { %1046 = vmatpush3.msra.mxu0 %v1210_v11 }
 0x363   :  { %1047 = vmatprep.subr.mxu0 %v1111_v0 }
 0x364   :  { %1048 = vmatpush3.msra.mxu0 %v1218_v12 }
 0x365   :  { %1071 = vmatprep.subr.mxu0 %v1111_v0 }
 0x415   :  { %v496_v5 = vpop.f32.mrf.mxu0 }
 0x416   :  { %v500_v7 = vadd.f32 %v496_v5, %v426_v3 }
 0x417   :  { %v1013_v10 = vpop.f32.mrf.mxu0 }
 0x418   :  { %1103 = vtanh.f32 %v500_v7 }
 0x425   :  { %v1104_v13 = vpop.eup %1103 }
 0x426   :  { %1031 = vmatmul.mubr.msk.f32.vlgmr.msra.gmra.mxu1 %vm101_vm1, %v1104_v13 }
 0x427   :  { %1053 = vmatpush3.msra.mxu1 %v1153_v1  ;;  %1068 = vmatprep.mubr.msk.f32.mxu1 %vm1112_vm0, %v1111_v0  ;;  %v503_v1 = vld [vmem:[#allocation2 + $0x28] sm:$0xff] }
 0x428   :  { %1054 = vmatprep.subr.mxu1 %v1111_v0 }
 0x429   :  { %1055 = vmatpush3.msra.mxu1 %v1158_v2 }
 0x42a   :  { %1056 = vmatprep.subr.mxu1 %v1111_v0 }
 0x42b   :  { %1057 = vmatpush3.msra.mxu1 %v1167_v4 }
 0x42c   :  { %1058 = vmatprep.subr.mxu1 %v1111_v0 }
 0x42d   :  { %1059 = vmatpush3.msra.mxu1 %v1178_v6 }
 0x42e   :  { %1060 = vmatprep.subr.mxu1 %v1111_v0 }
 0x42f   :  { %1061 = vmatpush3.msra.mxu1 %v1190_v8  ;;  %v580_v8 = vld [vmem:[#allocation2 + $0x30] sm:$0xff] }
 0x430   :  { %1062 = vmatprep.subr.mxu1 %v1111_v0 }
 0x431   :  { %1063 = vmatpush3.msra.mxu1 %v1198_v9 }
 0x432   :  { %1064 = vmatprep.subr.mxu1 %v1111_v0 }
 0x433   :  { %1065 = vmatpush3.msra.mxu1 %v1210_v11 }
 0x434   :  { %1066 = vmatprep.subr.mxu1 %v1111_v0 }
 0x435   :  { %1067 = vmatpush3.msra.mxu1 %v1218_v12  ;;  %v740_v12 = vld [vmem:[%s1444_s4 + $0x38] sm:$0xff] }
 0x4e6   :  { %v573_v2 = vpop.f32.mrf.mxu1 }
 0x4e7   :  { %v577_v4 = vadd.f32 %v573_v2, %v503_v1 }
 0x4e8   :  { %v1032_v6 = vpop.f32.mrf.mxu1 }
 0x4e9   :  { %1105 = vtanh.f32 %v577_v4 }
 0x4f6   :  { %v1106_v14 = vpop.eup %1105 }
 0x4f7   :  { %1050 = vmatmul.mubr.msk.f32.vlgmr.msra.gmra.mxu0 %vm101_vm1, %v1106_v14 }
 0x4f8   :  { %1087 = vmatprep.mubr.msk.f32.mxu0 %vm1112_vm0, %v1111_v0  ;;  %1072 = vmatpush3.msra.mxu0 %v740_v12 }
 0x4f9   :  { %1073 = vmatprep.subr.mxu0 %v1111_v0 }
 0x4fa   :  { %1074 = vmatpush3.msra.mxu0 %v739_v17 }
 0x4fb   :  { %1075 = vmatprep.subr.mxu0 %v1111_v0 }
 0x4fc   :  { %1076 = vmatpush3.msra.mxu0 %v738_v18 }
 0x4fd   :  { %1077 = vmatprep.subr.mxu0 %v1111_v0 }
 0x4fe   :  { %1078 = vmatpush3.msra.mxu0 %v737_v19 }
 0x4ff   :  { %1079 = vmatprep.subr.mxu0 %v1111_v0 }
 0x500   :  { %1080 = vmatpush3.msra.mxu0 %v736_v20 }
 0x501   :  { %1081 = vmatprep.subr.mxu0 %v1111_v0 }
 0x502   :  { %1082 = vmatpush3.msra.mxu0 %v735_v21 }
 0x503   :  { %1083 = vmatprep.subr.mxu0 %v1111_v0 }
 0x504   :  { %1084 = vmatpush3.msra.mxu0 %v734_v22 }
 0x505   :  { %1085 = vmatprep.subr.mxu0 %v1111_v0 }
 0x506   :  { %1086 = vmatpush3.msra.mxu0 %v733_v23 }
 0x5b7   :  { %v650_v9 = vpop.f32.mrf.mxu0 }
 0x5b8   :  { %v654_v15 = vadd.f32 %v650_v9, %v580_v8 }
 0x5b9   :  { %v1051_v16 = vpop.f32.mrf.mxu0 }
 0x5ba   :  { %1107 = vtanh.f32 %v654_v15 }
 0x5c7   :  { %v1108_v11 = vpop.eup %1107 }
 0x5c8   :  { %1069 = vmatmul.mubr.msk.f32.vlgmr.msra.gmra.mxu1 %vm101_vm1, %v1108_v11 }
 0x688   :  { %v727_v25 = vpop.f32.mrf.mxu1 }
 0x689   :  { %v731_v26 = vadd.f32 %v727_v25, %v657_v24 }
 0x68a   :  { %v1070_v27 = vpop.f32.mrf.mxu1 }
 0x68b   :  { %1109 = vtanh.f32 %v731_v26 }
 0x698   :  { %v1110_v28 = vpop.eup %1109 }
 0x699   :  { %1088 = vmatmul.mubr.msk.f32.vlgmr.msra.gmra.mxu0 %vm101_vm1, %v1110_v28 }
 0x759   :  { %v817_v30 = vpop.f32.mrf.mxu0 }
 0x75a   :  { %v818_v31 = vadd.f32 %v836_v29, %v817_v30 }
 0x75b   :  { %v1089_v32 = vpop.f32.mrf.mxu0 }
 0x75c   :  { %822 = vst.msk [vmem:[%s1446_s6] sm:$0xff] %vm821_vm2, %v818_v31 }

</bundles_post_ra>
